<compile_context>
chip_gen: v7x
topology: tpu7x:2x2x1
jax: 0.10.0
libtpu: 0.0.40
codegen_flags: <defaults>
</compile_context>

<pallas_src>
import functools

import jax
import jax.numpy as jnp
from jax.experimental import pallas as pl
from jax.experimental.pallas import tpu as pltpu

_LANES = 128
_SUBLANES = 8


def _round_up(x, m):
    return ((x + m - 1) // m) * m


def _round_down(x, m):
    return (x // m) * m


def _sublane_multiple(dtype):
    """Rows per packed vreg: 8 for 32-bit, 16 for bf16, 32 for 8-bit dtypes."""
    itemsize = jnp.dtype(dtype).itemsize
    return _SUBLANES * max(1, 4 // max(1, itemsize))


def _vmem_budget_bytes():
    """Generation-aware scoped-VMEM budget (headroom kept below physical)."""
    phys = 64 * 1024 * 1024  # conservative default = v7x physical VMEM
    try:
        info = pltpu.get_tpu_info()
        phys = int(getattr(info, "vmem_capacity_bytes", phys))
    except Exception:
        pass
    # 3/4 of physical, capped at 96 MiB: -> 96 MiB on v5e/v6e, 48 MiB on v7x.
    return min((phys * 3) // 4, 96 * 1024 * 1024)


def _focal_weight(one_minus_pt, gamma):
    """(1 - pt)^gamma with integer-gamma specialization (trace-time dispatch)."""
    g = float(gamma)
    if g == 0.0:
        return jnp.ones_like(one_minus_pt)
    if g.is_integer() and 1.0 <= g <= 8.0:
        w = one_minus_pt
        for _ in range(int(g) - 1):
            w = w * one_minus_pt
        return w
    return jnp.power(one_minus_pt, jnp.float32(g))


def _focal_loss_kernel(logits_ref, targets_ref, out_ref, *, gamma, n_total):
    # logits tile: (tile_n, C) in native dtype; cast to f32 on the VPU.
    logits = logits_ref[...].astype(jnp.float32)
    tgt = targets_ref[...]                                    # (tile_n, 1) int32
    tn, c = logits.shape

    # Numerically stable log-sum-exp over the class (lane) axis.
    m = jnp.max(logits, axis=-1, keepdims=True)               # (tile_n, 1)
    shifted = logits - m                                      # (tile_n, C), <= 0
    sumexp = jnp.sum(jnp.exp(shifted), axis=-1, keepdims=True)
    lse = jnp.log(sumexp)                                     # (tile_n, 1)

    # Target-class shifted logit: single compare + select (no one-hot cast+mul).
    class_ids = jax.lax.broadcasted_iota(jnp.int32, (tn, c), 1)
    target_shifted = jnp.sum(
        jnp.where(class_ids == tgt, shifted, 0.0), axis=-1, keepdims=True)

    # ce = -log_softmax[target]; the per-row exp for pt is negligible next to
    # the (tile_n, C) work above.
    ce = jnp.maximum(lse - target_shifted, 0.0)               # clamp rounding noise
    pt = jnp.exp(-ce)                                         # in (0, 1]
    one_minus_pt = jnp.maximum(1.0 - pt, 0.0)
    focal = _focal_weight(one_minus_pt, gamma) * ce           # (tile_n, 1)

    # Mask rows past N (last partial tile reads undefined VMEM rows).
    row_ids = pl.program_id(0) * tn + jax.lax.broadcasted_iota(jnp.int32, (tn, 1), 0)
    focal = jnp.where(row_ids < n_total, focal, 0.0)

    # Per-tile partial sum, broadcast over an (8, 128)-aligned block so the
    # store / writeback DMA is unmasked and lane-dense; the wrapper reads one
    # element per tile.
    out_ref[...] = jnp.broadcast_to(jnp.sum(focal), out_ref.shape).astype(out_ref.dtype)


def focal_loss(logits, targets, gamma=2.0, tile_n=None):
    """logits: (N, C) float (any dtype); targets: (N,) int.  Returns scalar f32."""
    n, c = logits.shape
    targets2d = targets.astype(jnp.int32).reshape(n, 1)
    in_itemsize = jnp.dtype(logits.dtype).itemsize
    row_mult = _sublane_multiple(logits.dtype)
    budget = _vmem_budget_bytes()

    if tile_n is None:
        # Real per-row VMEM working set:
        #   2x double-buffered logits tile (native dtype, lane-padded)
        # + ~5 full-size f32/int32 intermediates (f32 cast, shifted, exp,
        #   class iota, compare/select temp)
        # + 2x (tile_n, 1) int32 targets block padded to 128 lanes.
        c_pad = _round_up(c, _LANES)
        bytes_per_row = 2 * c_pad * in_itemsize + 5 * c_pad * 4 + 2 * _LANES * 4
        reserve = 2 * 1024 * 1024          # output blocks + compiler scratch slack
        max_rows = (budget - reserve) // bytes_per_row
        if max_rows < row_mult:
            # TODO(synk): class-axis-blocked online LSE needed for such C.
            raise ValueError(
                f"num_classes={c} too large for a single-tile logsumexp within "
                f"{budget // (1024 * 1024)} MiB of VMEM")
        # Keep the grid >= 2 steps when N allows so both v7x TensorCores work.
        half = _round_up(pl.cdiv(n, 2), row_mult)
        tile_n = min(_round_down(max_rows, row_mult), half)
    else:
        tile_n = max(row_mult, _round_down(int(tile_n), row_mult))

    if tile_n >= n:
        tile_n = n                         # single block == full array dim (legal)

    grid_n = pl.cdiv(n, tile_n)

    cost = pl.CostEstimate(
        flops=6 * n * c,
        transcendentals=n * c + 2 * n,
        bytes_accessed=n * c * in_itemsize + n * 4 + grid_n * _SUBLANES * _LANES * 4,
    )

    partial = pl.pallas_call(
        functools.partial(_focal_loss_kernel, gamma=gamma, n_total=n),
        out_shape=jax.ShapeDtypeStruct((grid_n, _SUBLANES, _LANES), jnp.float32),
        grid=(grid_n,),
        in_specs=[
            pl.BlockSpec((tile_n, c), lambda i: (i, 0)),
            pl.BlockSpec((tile_n, 1), lambda i: (i, 0)),
        ],
        out_specs=pl.BlockSpec((1, _SUBLANES, _LANES), lambda i: (i, 0, 0)),
        compiler_params=pltpu.CompilerParams(
            dimension_semantics=("parallel",),
            vmem_limit_bytes=budget,
        ),
        cost_estimate=cost,
    )(logits, targets2d)

    # One partial sum per tile (block-broadcast); tiny final reduce in XLA.
    return jnp.sum(partial[:, 0, 0]) / jnp.float32(n)


def focal_loss_ref(logits, targets, gamma=2.0):
    logits = logits.astype(jnp.float32)
    log_probs = jax.nn.log_softmax(logits, axis=-1)
    ce = -jnp.take_along_axis(
        log_probs, targets[:, None].astype(jnp.int32), axis=-1)[:, 0]
    pt = jnp.exp(-ce)
    return jnp.mean((1.0 - pt) ** gamma * ce)


if __name__ == "__main__":
    key = jax.random.PRNGKey(0)
    k1, k2 = jax.random.split(key)

    N, C = 20, 32  # small shapes; tile_n=8 gives a 3-step grid with a masked partial tile
    logits = jax.random.normal(k1, (N, C), dtype=jnp.float32)
    targets = jax.random.randint(k2, (N,), 0, C, dtype=jnp.int32)

    ref = focal_loss_ref(logits, targets, gamma=2.0)

    # Explicit small tile: exercises multi-step grid + masked partial last tile.
    loss_tiled = jax.block_until_ready(focal_loss(logits, targets, gamma=2.0, tile_n=8))
    assert jnp.allclose(loss_tiled, ref, rtol=1e-5, atol=1e-6), (loss_tiled, ref)

    # Auto tile: exercises the VMEM-budget / >=2-step-grid path.
    loss_auto = jax.block_until_ready(focal_loss(logits, targets, gamma=2.0))
    assert jnp.allclose(loss_auto, ref, rtol=1e-5, atol=1e-6), (loss_auto, ref)

    print("KERNEL_OK")
</pallas_src>

<mosaic_0001>
module attributes {stable_mosaic.version = 11 : i64} {
  func.func @_focal_loss_kernel(%arg0: i32, %arg1: memref<8x32xf32, #tpu.memory_space<vmem>>, %arg2: memref<8x1xi32, #tpu.memory_space<vmem>>, %arg3: memref<1x8x128xf32, #tpu.memory_space<vmem>>) attributes {dimension_semantics = [#tpu.dimension_semantics<parallel>], iteration_bounds = array<i64: 3>, scalar_prefetch = 0 : i64, scratch_operands = 0 : i64, tpu.core_type = #tpu.core_type<tc>, window_params = [{transform_indices = @transform_0, window_bounds = array<i64: 8, 32>}, {transform_indices = @transform_1, window_bounds = array<i64: 8, 1>}, {transform_indices = @transform_2, window_bounds = array<i64: 1, 8, 128>}]} {
    %c0 = arith.constant 0 : index
    %c0_0 = arith.constant 0 : index
    %0 = vector.load %arg1[%c0, %c0_0] : memref<8x32xf32, #tpu.memory_space<vmem>>, vector<8x32xf32>
    %c0_1 = arith.constant 0 : index
    %c0_2 = arith.constant 0 : index
    %1 = vector.load %arg2[%c0_1, %c0_2] : memref<8x1xi32, #tpu.memory_space<vmem>>, vector<8x1xi32>
    %cst = arith.constant dense<0xFF800000> : vector<8xf32>
    %2 = vector.multi_reduction <maximumf>, %0, %cst [1] : vector<8x32xf32> to vector<8xf32>
    %3 = vector.shape_cast %2 : vector<8xf32> to vector<8x1xf32>
    %4 = vector.broadcast %3 : vector<8x1xf32> to vector<8x32xf32>
    %5 = arith.subf %0, %4 : vector<8x32xf32>
    %6 = math.exp %5 : vector<8x32xf32>
    %cst_3 = arith.constant dense<0.000000e+00> : vector<8xf32>
    %7 = vector.multi_reduction <add>, %6, %cst_3 [1] : vector<8x32xf32> to vector<8xf32>
    %8 = vector.shape_cast %7 : vector<8xf32> to vector<8x1xf32>
    %9 = math.log %8 : vector<8x1xf32>
    %10 = tpu.iota {dimensions = array<i32: 1>} : vector<8x32xi32>
    %11 = vector.broadcast %1 : vector<8x1xi32> to vector<8x32xi32>
    %12 = arith.cmpi eq, %10, %11 : vector<8x32xi32>
    %cst_4 = arith.constant 0.000000e+00 : f32
    %13 = vector.broadcast %cst_4 : f32 to vector<8x32xf32>
    %14 = arith.select %12, %5, %13 : vector<8x32xi1>, vector<8x32xf32>
    %cst_5 = arith.constant dense<0.000000e+00> : vector<8xf32>
    %15 = vector.multi_reduction <add>, %14, %cst_5 [1] : vector<8x32xf32> to vector<8xf32>
    %16 = vector.shape_cast %15 : vector<8xf32> to vector<8x1xf32>
    %17 = arith.subf %9, %16 : vector<8x1xf32>
    %cst_6 = arith.constant 0.000000e+00 : f32
    %18 = vector.broadcast %cst_6 : f32 to vector<8x1xf32>
    %19 = arith.maximumf %17, %18 : vector<8x1xf32>
    %cst_7 = arith.constant 0.000000e+00 : f32
    %20 = vector.broadcast %cst_7 : f32 to vector<8x1xf32>
    %21 = arith.subf %20, %19 : vector<8x1xf32>
    %22 = math.exp %21 : vector<8x1xf32>
    %cst_8 = arith.constant 1.000000e+00 : f32
    %23 = vector.broadcast %cst_8 : f32 to vector<8x1xf32>
    %24 = arith.subf %23, %22 : vector<8x1xf32>
    %cst_9 = arith.constant 0.000000e+00 : f32
    %25 = vector.broadcast %cst_9 : f32 to vector<8x1xf32>
    %26 = arith.maximumf %24, %25 : vector<8x1xf32>
    %27 = arith.mulf %26, %26 : vector<8x1xf32>
    %28 = arith.mulf %27, %19 : vector<8x1xf32>
    %c8_i32 = arith.constant 8 : i32
    %29 = arith.muli %arg0, %c8_i32 : i32
    %30 = tpu.iota {dimensions = array<i32: 0>} : vector<8x1xi32>
    %31 = vector.broadcast %29 : i32 to vector<8x1xi32>
    %32 = arith.addi %31, %30 : vector<8x1xi32>
    %c20_i32 = arith.constant 20 : i32
    %33 = vector.broadcast %c20_i32 : i32 to vector<8x1xi32>
    %34 = arith.cmpi slt, %32, %33 : vector<8x1xi32>
    %cst_10 = arith.constant 0.000000e+00 : f32
    %35 = vector.broadcast %cst_10 : f32 to vector<8x1xf32>
    %36 = arith.select %34, %28, %35 : vector<8x1xi1>, vector<8x1xf32>
    %37 = vector.shape_cast %36 : vector<8x1xf32> to vector<1x8x1xf32>
    %cst_11 = arith.constant dense<0.000000e+00> : vector<1xf32>
    %38 = vector.multi_reduction <add>, %37, %cst_11 [1, 2] : vector<1x8x1xf32> to vector<1xf32>
    %39 = vector.shape_cast %38 : vector<1xf32> to vector<1x1x1xf32>
    %40 = vector.extract %39[0, 0, 0] : f32 from vector<1x1x1xf32>
    %41 = vector.broadcast %40 : f32 to vector<1x8x128xf32>
    %c0_12 = arith.constant 0 : index
    %c0_13 = arith.constant 0 : index
    %c0_14 = arith.constant 0 : index
    %42 = vector.load %arg3[%c0_12, %c0_13, %c0_14] : memref<1x8x128xf32, #tpu.memory_space<vmem>>, vector<1x8x128xf32>
    tpu.vector_store %arg3[%c0_12, %c0_13, %c0_14], %41 {strides = array<i32>} : memref<1x8x128xf32, #tpu.memory_space<vmem>>, vector<1x8x128xf32>,
    return
  }
  func.func @transform_0(%arg0: i32) -> (i32, i32) {
    %c0_i32 = arith.constant 0 : i32
    %c0_i32_0 = arith.constant 0 : i32
    return %arg0, %c0_i32 : i32, i32
  }
  func.func @transform_1(%arg0: i32) -> (i32, i32) {
    %c0_i32 = arith.constant 0 : i32
    %c0_i32_0 = arith.constant 0 : i32
    return %arg0, %c0_i32 : i32, i32
  }
  func.func @transform_2(%arg0: i32) -> (i32, i32, i32) {
    %c0_i32 = arith.constant 0 : i32
    %c0_i32_0 = arith.constant 0 : i32
    %c0_i32_1 = arith.constant 0 : i32
    return %arg0, %c0_i32, %c0_i32_0 : i32, i32, i32
  }
}

</mosaic_0001>

<bundles_post_ra>
// kernel: tpu_custom_call.1
= control target key start
LH: loop header
LB: loop body
LE: loop exit
PB: predicated region body
PF: predicated region fallthrough
CT: control target
= control target key end

     0   :  { %7 = vsyncpa [#allocation3], 0  ;;  %s543_s0 = inlined_call_operand.vmem [shape: f32[20,32], index: 0, kind: input, shape index: {}]   ;;  %s544_s1 = inlined_call_operand.vmem [shape: s32[20,1], index: 1, kind: input, shape index: {}]   ;;  %s545_s2 = inlined_call_operand.hbm [shape: f32[3,8,128], index: 2, kind: output, shape index: {}]  }
   0x1   :  { %9 = vsyncpa [#allocation3 + $0x1], 0  ;;  %s436_s9 = smov 0   ;;  %s438_s10 = smov 0  }
   0x2   :  { %s440_s11 = smov 0   ;;  %s442_s12 = smov 0  }
   0x3 LB: > { %s457_s13 = sadd.s32 4294967295, %s417_s12   ;;  %s294_s14 = sadd.s32 4294967294, %s417_s12   ;;  %s417_s12 = sphi %s442_s12, %s551_s12   ;;  %s413_s11 = sphi %s440_s11, %s550_s11   ;;  %s409_s10 = sphi %s438_s10, %s549_s10   ;;  %s405_s9 = sphi %s436_s9, %s548_s9  }
   0x4   : > { %s461_s15 = sadd.s32 1, %s417_s12   ;;  %s74_s16 = sadd.s32 1, %s413_s11 }
   0x5   : > { %s71_s17 = ssub.s32 %s417_s12, %s461_s15  ;;  %p84_p0 = scmp.ne.s32.totalorder %s413_s11, %s409_s10 }
   0x6   : > { %p72_p1 = scmp.eq.s32.totalorder %s71_s17, 0  ;;  %p85_p2 = scmp.eq.s32.totalorder %s457_s13, 2 }
   0x7   : > { %p90_p3 = scmp.ne.s32.totalorder %s409_s10, %s405_s9  ;;  %p91_p4 = scmp.eq.s32.totalorder %s294_s14, 2 }
   0x8   : > { %s472_s18 = scalar_select %p72_p1, %s413_s11, %s74_s16  }
   0x9   : > { %p474_p5 = por %p85_p2, %p84_p0  ;;  %p478_p6 = por %p91_p4, %p90_p3 }
   0xa   : > { %p297_p7 = scmp.ge.s32.totalorder %s417_s12, 1  ;;  %p123_p8 = scmp.lt.s32.totalorder %s417_s12, 4 }
   0xc   : > { %p124_p9 = pnand %p297_p7, %p123_p8 }
   0xd   : > { %p148_p10 = scmp.lt.s32.totalorder (!%p124_p9), %s457_s13, 2  ;;  %v419_v0 = vmov (!%p124_p9), 0   ;;  %vm158_vm0 = vcmask (!%p124_p9), 261120   ;;  %v170_v7 = vlaneseq (!%p124_p9)  ;;  %s301_s29 = sshll.u32 (!%p124_p9), %s457_s13, 3  ;;  %vm196_vm3 = vcmask (!%p124_p9), 7168  }
   0xe   : > { %127 = sbr.rel (%p124_p9) target bundleno = 588 (0x24c), region = 28  ;;  %348 = vset.pattern.permute.xlu0 (!%p124_p9), %v419_v0  ;;  %v192_v23 = vstv (!%p124_p9), %s301_s29  ;;  %s145_s30 = sand.u32 (!%p124_p9), 1, %s409_s10  }
   0xf   : > { %v171_v8 = vand.u32 (!%p124_p9), 127, %v170_v7  ;;  %v191_v22 = vshrl.u32 (!%p124_p9), %v170_v7, 7  ;;  %s298_s3 = sshll.u32 (!%p124_p9), %s145_s30, 3  ;;  %s303_s6 = sshll.u32 (!%p124_p9), %s457_s13, 7 }
  0x10   : > { %s147_s4 = scalar_lea.vmem (!%p124_p9), [#allocation2], %s298_s3  ;;  %s503_s16 = scalar_lea.hbm (!%p124_p9), %s545_s2, %s303_s6 }
  0x11   : > { %v193_v26 = vadd.s32 (!%p124_p9), %v192_v23, %v191_v22  ;;  %s223_s5 = sshll.u32 (!%p124_p9), %s147_s4, 4  ;;  %s210_s17 = scalar_lea.sflag (!%p124_p9), [#allocation3], %s145_s30  ;;  %s498_s5 = int_to_ptr.vmem [resolvable:$true] %s223_s5 }
  0x13   : > { %vm194_vm2 = vcmp.lt.s32.totalorder (!%p124_p9), %v193_v26, 20 }
  0x15   : > { %s149_s21 = scalar_select %p148_p10, %s457_s13, 2 }
  0x16   : > { %s420_s13 = smov [#allocation2]  }
  0x17   : > { %s299_s22 = sshll.u32 %s149_s21, 3  ;;  %s355_s21 = scalar_lea.vmem %s498_s5, 128 }
  0x18   : > { %s151_s25 = scalar_lea.vmem %s543_s0, %s299_s22  ;;  %s155_s28 = scalar_lea.vmem %s544_s1, %s299_s22 }
  0x19   : > { %v156_v1 = vld [vmem:[%s151_s25] sm:$0xff]  ;;  %p356_p11 = scmp.ne.s32.totalorder %s498_s5, %s355_s21  ;;  %s359_s22 = sshll.u32 %s420_s13, 4  ;;  %s360_s22 = int_to_ptr.vmem [resolvable:$false] %s359_s22 }
  0x1a   : > { %v159_v2 = vsel %vm158_vm0, %v156_v1, -inf  ;;  %v157_v3 = vld [vmem:[%s155_s28] sm:$0xff]  ;;  %s361_s23 = scalar_lea.vmem %s360_s22, 256  ;;  %p362_p0 = scmp.lt.s32.totalorder %s498_s5, %s360_s22 }
  0x1b   : > { %160 = vmax.xlane.f32.xlu0 %v159_v2  ;;  %p357_p12 = pnand %p356_p11, %p474_p5  ;;  %p363_p1 = scmp.lt.s32.totalorder %s361_s23, %s355_s21 }
  0x1d   : > { %p358_p13 = pneg %p357_p12  ;;  %p364_p2 = por %p363_p1, %p362_p0 }
  0x1f   : > { %p365_p3 = pnand %p364_p2, %p358_p13 }
  0x31   : > { %173 = vperm.xlu0 %348, %v157_v3  }
  0xa8   : > { %v161_v4 = vpop.xlane.xlu0 %160 }
  0xa9   : > { %v162_v5 = vsub.f32 %v156_v1, %v161_v4 }
  0xab   : > { %v163_v6 = vmul.f32 1.442695, %v162_v5 }
  0xad   : > { %349 = vpow2.f32 %v163_v6 }
  0xb0   : > { %v174_v9 = vpop.permute.xlu0 %173 }
  0xb1   : > { %vm175_vm1 = vcmp.eq.s32.totalorder %v171_v8, %v174_v9 }
  0xb2   : > { %v176_v12 = vsel %vm175_vm1, %v162_v5, 0.0 }
  0xb3   : > { %v177_v13 = vsel %vm158_vm0, %v176_v12, 0.0 }
  0xb7   : > { %v350_v10 = vpop.eup %349 }
  0xb8   : > { %v165_v11 = vsel %vm158_vm0, %v350_v10, 0.0 }
  0xb9   : > { %166 = vadd.xlane.f32.xlu1 %v165_v11 }
  0xbd   : > { %178 = vadd.xlane.f32.xlu1 %v177_v13 }
 0x146   : > { %v167_v14 = vpop.xlane.xlu1 %166 }
 0x147   : > { %351 = vlog2.f32 %v167_v14 }
 0x14a   : > { %v179_v17 = vpop.xlane.xlu1 %178 }
 0x151   : > { %v352_v15 = vpop.eup %351 }
 0x152   : > { %v169_v16 = vmul.f32 0.6931472, %v352_v15 }
 0x154   : > { %v180_v18 = vsub.f32 %v169_v16, %v179_v17 }
 0x156   : > { %v181_v19 = vmax.f32 %v180_v18, 0.0 }
 0x158   : > { %v182_v20 = vsub.f32 0.0, %v181_v19 }
 0x15a   : > { %v183_v21 = vmul.f32 1.442695, %v182_v20 }
 0x15c   : > { %353 = vpow2.f32 %v183_v21 }
 0x166   : > { %v354_v24 = vpop.eup %353 }
 0x167   : > { %v185_v25 = vsub.f32 1.0, %v354_v24 }
 0x169   : > { %v186_v27 = vmax.f32 %v185_v25, 0.0 }
 0x16b   : > { %v187_v28 = vmul.f32 %v186_v27, %v186_v27 }
 0x16d   : > { %v188_v29 = vmul.f32 %v187_v28, %v181_v19 }
 0x16f   : > { %v195_v30 = vsel %vm194_vm2, %v188_v29, 0.0 }
 0x170   : > { %v197_v31 = vsel %vm196_vm3, %v195_v30, 0.0 }
 0x171   : > { %198 = vadd.xlane.f32.xlu1 %v197_v31 }
 0x1fe   : > { %v199_v32 = vpop.xlane.xlu1 %198 }
 0x1ff   : > { %v200_v33 = vrot.slane %v199_v32, 4 }
 0x201   : > { %v201_v34 = vadd.f32 %v200_v33, %v199_v32 }
 0x203   : > { %v202_v35 = vrot.slane %v201_v34, 2 }
 0x205   : > { %v203_v36 = vadd.f32 %v202_v35, %v201_v34 }
 0x207   : > { %v204_v37 = vrot.slane %v203_v36, 1 }
 0x209   : > { %v205_v38 = vadd.f32 %v204_v37, %v203_v36 }
 0x20b   : > { %306 = vpush %v205_v38 }
 0x23c   : > { %s307_s7 = spop %306 }
 0x23d   : > { %v207_v39 = vstv %s307_s7 }
 0x23e   : > { %208 = vst [vmem:[%s147_s4] sm:$0xff] %v207_v39 }
 0x23f   : > { %368 = shalt.err (!%p365_p3)
}
 0x240   : > { %s369_s24 = scalar_lea.hbm %s503_s16, 128  ;;  %s373_s27 = scalar_lea.hbm %s545_s2, 384 }
 0x241   : > { %p370_p4 = scmp.ne.s32.totalorder %s503_s16, %s369_s24  ;;  %p374_p9 = scmp.lt.u32.totalorder %s503_s16, %s545_s2 }
 0x242   : > { %p375_p10 = scmp.lt.u32.totalorder %s373_s27, %s369_s24  ;;  %p377_p12 = scmp.lt.u32.totalorder %s369_s24, %s503_s16 }
 0x243   : > { %p371_p7 = pnand %p370_p4, %p474_p5 }
 0x244   : > { %p376_p11 = por %p375_p10, %p374_p9 }
 0x245   : > { %p372_p8 = pneg %p371_p7 }
 0x246   : > { %p378_p13 = por %p377_p12, %p376_p11 }
 0x248   : > { %p379_p0 = pnand %p378_p13, %p372_p8 }
 0x24a   : > { %382 = shalt.err (!%p379_p0)
}
 0x24b   : > { %308 = dma.vmem_to_hbm [thread:$0]  (%p474_p5), %s498_s5, 128, %s503_s16, %s210_s17  }
 0x24c PF: > { %p314_p1 = scmp.ge.s32.totalorder %s417_s12, 2  ;;  %s235_s30 = sand.u32 1, %s405_s9  }
 0x24d   : > { %s236_s3 = scalar_lea.sflag [#allocation3], %s235_s30 }
 0x24e   : > { %p311_p2 = pnand %p314_p1, %p478_p6 }
 0x250   : > { %400 = dma.done.wait (!%p311_p2), %s236_s3, 128  }
 0x251   : > { %402 = vsyncadd (!%p311_p2), %s236_s3, 4294967168  ;;  %p12_p3 = scmp.ge.s32.totalorder %s461_s15, 5   ;;  %s548_s9 = smov %s409_s10 }
 0x252   : > { %s549_s10 = smov %s413_s11  ;;  %s550_s11 = smov %s472_s18 }
 0x253   : > { %s551_s12 = smov %s461_s15  ;;  %14 = sbr.rel (!%p12_p3) target bundleno = 3 (0x3), region = 66 }
 0x25a   :  { %241 = vsyncpa [#allocation3], 1 }
 0x25b   :  { %243 = vsyncpa [#allocation3 + $0x1], 1 }

</bundles_post_ra>
